<compile_context>
chip_gen: v5e
topology: v5e:2x2
jax: 0.10.0
libtpu: 0.0.40
codegen_flags: <defaults>
</compile_context>

<pallas_src>
import functools

import numpy as np
import jax
import jax.numpy as jnp
from jax.experimental import pallas as pl
from jax.experimental.pallas import tpu as pltpu


def _round_up(a, b):
    return (a + b - 1) // b * b


# -----------------------------------------------------------------------------
# Pallas kernel: banded causal convolution as two resident-weight MXU matmuls
#   out_rows = Xcur_rows @ H0 + Xprev_rows @ H1
# -----------------------------------------------------------------------------
def _band_conv_kernel(xc_ref, xp_ref, h0_ref, h1_ref, o_ref):
    acc = jnp.dot(xc_ref[...], h0_ref[...], preferred_element_type=jnp.float32)
    acc = acc + jnp.dot(xp_ref[...], h1_ref[...], preferred_element_type=jnp.float32)
    o_ref[...] = acc.astype(o_ref.dtype)


def band_conv_pallas(xc, xp, h0, h1, *, tm):
    """xc/xp: (M, TT) f32, h0/h1: (TT, TT) f32 -> (M, TT) = xc @ h0 + xp @ h1."""
    M, TT = xc.shape
    assert M % tm == 0 and tm % 8 == 0 and TT % 128 == 0
    return pl.pallas_call(
        _band_conv_kernel,
        out_shape=jax.ShapeDtypeStruct((M, TT), jnp.float32),
        grid_spec=pltpu.PrefetchScalarGridSpec(
            num_scalar_prefetch=0,
            grid=(M // tm,),
            in_specs=[
                pl.BlockSpec((tm, TT), lambda i: (i, 0)),
                pl.BlockSpec((tm, TT), lambda i: (i, 0)),
                pl.BlockSpec((TT, TT), lambda i: (0, 0)),  # H0: resident in VMEM
                pl.BlockSpec((TT, TT), lambda i: (0, 0)),  # H1: resident in VMEM
            ],
            out_specs=pl.BlockSpec((tm, TT), lambda i: (i, 0)),
        ),
        compiler_params=pltpu.CompilerParams(
            dimension_semantics=("parallel",)  # megacore-shardable on v7x
        ),
    )(xc, xp, h0, h1)


# -----------------------------------------------------------------------------
# Forward pass
# -----------------------------------------------------------------------------
@functools.partial(
    jax.jit, static_argnames=("length", "sampling_rate", "time_tile")
)
def reverb_forward(x, noise, decay, wet, t, *, length, sampling_rate, time_tile=256):
    """x: (B, lenx, 1) f32 -> (B, lenx, 1) f32."""
    del sampling_rate  # the t buffer is already precomputed from it
    B, lenx, _ = x.shape
    L = length

    # --- impulse response (L elements; plain jnp per perf review) ------------
    sp = jax.nn.softplus(-decay)
    env = jnp.exp(-sp * t.reshape(-1) * 500.0)                 # (L,)
    h = noise.reshape(-1) * env * jax.nn.sigmoid(wet)          # (L,)
    h = h.at[0].set(1.0)

    # --- band tiles H0 (diagonal) / H1 (super-diagonal), (TT, TT) each -------
    TT = max(time_tile, _round_up(L, 128))                     # need L <= TT
    h_pad = jnp.pad(h, (0, 2 * TT - L))                        # zeros beyond L
    mm = jnp.arange(TT)[:, None]                               # input pos within tile
    nn = jnp.arange(TT)[None, :]                               # output pos within tile
    d0 = nn - mm
    H0 = jnp.where(d0 >= 0, h_pad[jnp.clip(d0, 0, 2 * TT - 1)], 0.0)
    H1 = h_pad[nn - mm + TT]                                   # zeros where tap >= L

    # --- stack (batch, time-tile) along the matmul M dimension ---------------
    Np = _round_up(lenx, TT)
    Nt = Np // TT
    xs = jnp.pad(x[..., 0], ((0, 0), (0, Np - lenx)))          # (B, Np)
    x3 = xs.reshape(B, Nt, TT)
    xp3 = jnp.pad(x3, ((0, 0), (1, 0), (0, 0)))[:, :Nt, :]     # previous tile (0 at j=0)
    Xc = x3.reshape(B * Nt, TT)
    Xp = xp3.reshape(B * Nt, TT)

    M_rows = B * Nt
    tm = min(256, _round_up(M_rows, 8))
    Mp = _round_up(M_rows, tm)
    Xc = jnp.pad(Xc, ((0, Mp - M_rows), (0, 0)))
    Xp = jnp.pad(Xp, ((0, Mp - M_rows), (0, 0)))

    Y = band_conv_pallas(Xc, Xp, H0, H1, tm=tm)                # (Mp, TT)
    y = Y[:M_rows].reshape(B, Nt * TT)[:, :lenx]
    return y[..., None]


# -----------------------------------------------------------------------------
# Pure-JAX reference mirroring the PyTorch code (build_impulse + fft_convolve)
# -----------------------------------------------------------------------------
def reference_forward(x, noise, decay, wet, t, length):
    sp = jax.nn.softplus(-decay)
    env = jnp.exp(-sp * t * 500.0)                 # (1, L, 1)
    imp = noise * env                              # (L,1)*(1,L,1) -> (1, L, 1)
    imp = imp * jax.nn.sigmoid(wet)
    imp = imp.at[:, 0].set(1.0)
    lenx = x.shape[1]
    imp = jnp.pad(imp, ((0, 0), (0, lenx - length), (0, 0)))
    sig = x[..., 0]                                # (B, N)
    ker = imp[..., 0]                              # (1, N)
    N = sig.shape[-1]
    sig_p = jnp.pad(sig, ((0, 0), (0, N)))
    ker_p = jnp.pad(ker, ((0, 0), (N, 0)))
    out = jnp.fft.irfft(jnp.fft.rfft(sig_p) * jnp.fft.rfft(ker_p))
    out = out[..., out.shape[-1] // 2:]
    return out[..., None]


if __name__ == "__main__":
    LENGTH = 64          # impulse response length
    SR = 16000           # sampling rate
    B, LENX = 4, 1000    # batch, signal length (deliberately not a multiple of 128)

    key = jax.random.PRNGKey(0)
    k_noise, k_x = jax.random.split(key)

    # Parameters (matching nn.Parameter init shapes)
    noise = jax.random.uniform(k_noise, (LENGTH, 1), jnp.float32) * 2.0 - 1.0
    decay = jnp.asarray(5.0, jnp.float32)
    wet = jnp.asarray(0.0, jnp.float32)
    t = (jnp.arange(LENGTH, dtype=jnp.float32) / SR).reshape(1, LENGTH, 1)

    # Input signal
    x = jax.random.normal(k_x, (B, LENX, 1), jnp.float32)

    y = reverb_forward(x, noise, decay, wet, t, length=LENGTH, sampling_rate=SR)
    y = jax.block_until_ready(y)

    y_ref = reference_forward(x, noise, decay, wet, t, LENGTH)
    np.testing.assert_allclose(
        np.asarray(y), np.asarray(y_ref), rtol=2e-3, atol=2e-3
    )

    print("KERNEL_OK")
</pallas_src>

<mosaic_0001>
module attributes {stable_mosaic.version = 11 : i64} {
  func.func @_band_conv_kernel(%arg0: i32, %arg1: memref<16x256xf32, #tpu.memory_space<vmem>>, %arg2: memref<16x256xf32, #tpu.memory_space<vmem>>, %arg3: memref<256x256xf32, #tpu.memory_space<vmem>>, %arg4: memref<256x256xf32, #tpu.memory_space<vmem>>, %arg5: memref<16x256xf32, #tpu.memory_space<vmem>>) attributes {dimension_semantics = [#tpu.dimension_semantics<parallel>], iteration_bounds = array<i64: 1>, scalar_prefetch = 0 : i64, scratch_operands = 0 : i64, tpu.core_type = #tpu.core_type<tc>, window_params = [{transform_indices = @transform_0, window_bounds = array<i64: 16, 256>}, {transform_indices = @transform_1, window_bounds = array<i64: 16, 256>}, {pipeline_mode = #tpu.pipeline_mode<synchronous>, transform_indices = @transform_2, window_bounds = array<i64: 256, 256>}, {pipeline_mode = #tpu.pipeline_mode<synchronous>, transform_indices = @transform_3, window_bounds = array<i64: 256, 256>}, {transform_indices = @transform_4, window_bounds = array<i64: 16, 256>}]} {
    %c0 = arith.constant 0 : index
    %c0_0 = arith.constant 0 : index
    %0 = vector.load %arg1[%c0, %c0_0] : memref<16x256xf32, #tpu.memory_space<vmem>>, vector<16x256xf32>
    %c0_1 = arith.constant 0 : index
    %c0_2 = arith.constant 0 : index
    %1 = vector.load %arg3[%c0_1, %c0_2] : memref<256x256xf32, #tpu.memory_space<vmem>>, vector<256x256xf32>
    %cst = arith.constant dense<0.000000e+00> : vector<16x256xf32>
    %2 = tpu.matmul %0, %1, %cst {dimension_numbers = #tpu.dot_dimension_numbers<[1], [0], [0], [1], [0, 0, 1, 1], [], []>} : vector<16x256xf32>, vector<256x256xf32>, vector<16x256xf32> -> vector<16x256xf32>
    %c0_3 = arith.constant 0 : index
    %c0_4 = arith.constant 0 : index
    %3 = vector.load %arg2[%c0_3, %c0_4] : memref<16x256xf32, #tpu.memory_space<vmem>>, vector<16x256xf32>
    %c0_5 = arith.constant 0 : index
    %c0_6 = arith.constant 0 : index
    %4 = vector.load %arg4[%c0_5, %c0_6] : memref<256x256xf32, #tpu.memory_space<vmem>>, vector<256x256xf32>
    %cst_7 = arith.constant dense<0.000000e+00> : vector<16x256xf32>
    %5 = tpu.matmul %3, %4, %cst_7 {dimension_numbers = #tpu.dot_dimension_numbers<[1], [0], [0], [1], [0, 0, 1, 1], [], []>} : vector<16x256xf32>, vector<256x256xf32>, vector<16x256xf32> -> vector<16x256xf32>
    %6 = arith.addf %2, %5 : vector<16x256xf32>
    %c0_8 = arith.constant 0 : index
    %c0_9 = arith.constant 0 : index
    %7 = vector.load %arg5[%c0_8, %c0_9] : memref<16x256xf32, #tpu.memory_space<vmem>>, vector<16x256xf32>
    tpu.vector_store %arg5[%c0_8, %c0_9], %6 {strides = array<i32>} : memref<16x256xf32, #tpu.memory_space<vmem>>, vector<16x256xf32>,
    return
  }
  func.func @transform_0(%arg0: i32) -> (i32, i32) {
    %c0_i32 = arith.constant 0 : i32
    %c0_i32_0 = arith.constant 0 : i32
    return %arg0, %c0_i32 : i32, i32
  }
  func.func @transform_1(%arg0: i32) -> (i32, i32) {
    %c0_i32 = arith.constant 0 : i32
    %c0_i32_0 = arith.constant 0 : i32
    return %arg0, %c0_i32 : i32, i32
  }
  func.func @transform_2(%arg0: i32) -> (i32, i32) {
    %c0_i32 = arith.constant 0 : i32
    %c0_i32_0 = arith.constant 0 : i32
    %c0_i32_1 = arith.constant 0 : i32
    return %c0_i32, %c0_i32_0 : i32, i32
  }
  func.func @transform_3(%arg0: i32) -> (i32, i32) {
    %c0_i32 = arith.constant 0 : i32
    %c0_i32_0 = arith.constant 0 : i32
    %c0_i32_1 = arith.constant 0 : i32
    return %c0_i32, %c0_i32_0 : i32, i32
  }
  func.func @transform_4(%arg0: i32) -> (i32, i32) {
    %c0_i32 = arith.constant 0 : i32
    %c0_i32_0 = arith.constant 0 : i32
    return %arg0, %c0_i32 : i32, i32
  }
}

</mosaic_0001>

<bundles_post_ra>
// kernel: reverb_forward.1
= control target key start
LH: loop header
LB: loop body
LE: loop exit
PB: predicated region body
PF: predicated region fallthrough
CT: control target
= control target key end

     0   :  { %s790_s3 = inlined_call_operand.vmem [shape: f32[256,256], index: 3, kind: input, shape index: {}]   ;;  %s791_s2 = inlined_call_operand.vmem [shape: f32[256,256], index: 2, kind: input, shape index: {}]   ;;  %s792_s1 = inlined_call_operand.vmem [shape: f32[16,256], index: 1, kind: input, shape index: {}]   ;;  %s793_s0 = inlined_call_operand.vmem [shape: f32[16,256], index: 0, kind: input, shape index: {}]   ;;  %s794_s4 = inlined_call_operand.vmem [shape: f32[16,256], index: 4, kind: output, shape index: {}]  }
   0x1   :  { %v119_v0 = vld [vmem:[%s790_s3 + $0xf0] sm:$0xff]  ;;  %v120_v1 = vld [vmem:[%s790_s3 + $0xf8] sm:$0xff]  ;;  %v117_v2 = vld [vmem:[%s790_s3 + $0xe0] sm:$0xff] }
   0x2   :  { %153 = vmatpush.msra.mxu0 %v119_v0  ;;  %199 = vmatpush.msra.mxu2 %v120_v1  ;;  %v151_v3 = vld [vmem:[%s790_s3 + $0x1f0] sm:$0xff]  ;;  %v118_v4 = vld [vmem:[%s790_s3 + $0xe8] sm:$0xff]  ;;  %v152_v5 = vld [vmem:[%s790_s3 + $0x1f8] sm:$0xff] }
   0x3   :  { %176 = vmatpush.msra.mxu1 %v151_v3  ;;  %222 = vmatpush.msra.mxu3 %v152_v5  ;;  %v115_v6 = vld [vmem:[%s790_s3 + $0xd0] sm:$0xff]  ;;  %v149_v7 = vld [vmem:[%s790_s3 + $0x1e0] sm:$0xff]  ;;  %v116_v8 = vld [vmem:[%s790_s3 + $0xd8] sm:$0xff] }
   0x4   :  { %154 = vmatpush.msra.mxu0 %v117_v2  ;;  %200 = vmatpush.msra.mxu2 %v118_v4  ;;  %v150_v9 = vld [vmem:[%s790_s3 + $0x1e8] sm:$0xff]  ;;  %v147_v10 = vld [vmem:[%s790_s3 + $0x1d0] sm:$0xff]  ;;  %v113_v11 = vld [vmem:[%s790_s3 + $0xc0] sm:$0xff] }
   0x5   :  { %177 = vmatpush.msra.mxu1 %v149_v7  ;;  %223 = vmatpush.msra.mxu3 %v150_v9  ;;  %v114_v12 = vld [vmem:[%s790_s3 + $0xc8] sm:$0xff]  ;;  %v148_v13 = vld [vmem:[%s790_s3 + $0x1d8] sm:$0xff]  ;;  %v145_v14 = vld [vmem:[%s790_s3 + $0x1c0] sm:$0xff] }
   0x6   :  { %155 = vmatpush.msra.mxu0 %v115_v6  ;;  %201 = vmatpush.msra.mxu2 %v116_v8  ;;  %v146_v15 = vld [vmem:[%s790_s3 + $0x1c8] sm:$0xff]  ;;  %v111_v16 = vld [vmem:[%s790_s3 + $0xb0] sm:$0xff]  ;;  %v112_v17 = vld [vmem:[%s790_s3 + $0xb8] sm:$0xff] }
   0x7   :  { %178 = vmatpush.msra.mxu1 %v147_v10  ;;  %224 = vmatpush.msra.mxu3 %v148_v13  ;;  %v143_v18 = vld [vmem:[%s790_s3 + $0x1b0] sm:$0xff]  ;;  %v144_v19 = vld [vmem:[%s790_s3 + $0x1b8] sm:$0xff]  ;;  %v109_v20 = vld [vmem:[%s790_s3 + $0xa0] sm:$0xff] }
   0x8   :  { %156 = vmatpush.msra.mxu0 %v113_v11  ;;  %202 = vmatpush.msra.mxu2 %v114_v12  ;;  %v110_v21 = vld [vmem:[%s790_s3 + $0xa8] sm:$0xff]  ;;  %v141_v22 = vld [vmem:[%s790_s3 + $0x1a0] sm:$0xff]  ;;  %v107_v24 = vld [vmem:[%s790_s3 + $0x90] sm:$0xff] }
   0x9   :  { %179 = vmatpush.msra.mxu1 %v145_v14  ;;  %225 = vmatpush.msra.mxu3 %v146_v15  ;;  %v142_v23 = vld [vmem:[%s790_s3 + $0x1a8] sm:$0xff]  ;;  %v108_v25 = vld [vmem:[%s790_s3 + $0x98] sm:$0xff]  ;;  %v139_v26 = vld [vmem:[%s790_s3 + $0x190] sm:$0xff] }
   0xa   :  { %157 = vmatpush.msra.mxu0 %v111_v16  ;;  %203 = vmatpush.msra.mxu2 %v112_v17  ;;  %v140_v27 = vld [vmem:[%s790_s3 + $0x198] sm:$0xff]  ;;  %v105_v28 = vld [vmem:[%s790_s3 + $0x80] sm:$0xff]  ;;  %v106_v29 = vld [vmem:[%s790_s3 + $0x88] sm:$0xff] }
   0xb   :  { %180 = vmatpush.msra.mxu1 %v143_v18  ;;  %226 = vmatpush.msra.mxu3 %v144_v19  ;;  %v137_v30 = vld [vmem:[%s790_s3 + $0x180] sm:$0xff]  ;;  %v138_v31 = vld [vmem:[%s790_s3 + $0x188] sm:$0xff]  ;;  %v103_v32 = vld [vmem:[%s790_s3 + $0x70] sm:$0xff] }
   0xc   :  { %158 = vmatpush.msra.mxu0 %v109_v20  ;;  %204 = vmatpush.msra.mxu2 %v110_v21  ;;  %v104_v33 = vld [vmem:[%s790_s3 + $0x78] sm:$0xff]  ;;  %v135_v34 = vld [vmem:[%s790_s3 + $0x170] sm:$0xff]  ;;  %v101_v36 = vld [vmem:[%s790_s3 + $0x60] sm:$0xff] }
   0xd   :  { %181 = vmatpush.msra.mxu1 %v141_v22  ;;  %227 = vmatpush.msra.mxu3 %v142_v23  ;;  %v136_v35 = vld [vmem:[%s790_s3 + $0x178] sm:$0xff]  ;;  %v102_v37 = vld [vmem:[%s790_s3 + $0x68] sm:$0xff]  ;;  %v133_v38 = vld [vmem:[%s790_s3 + $0x160] sm:$0xff] }
   0xe   :  { %159 = vmatpush.msra.mxu0 %v107_v24  ;;  %205 = vmatpush.msra.mxu2 %v108_v25  ;;  %v134_v39 = vld [vmem:[%s790_s3 + $0x168] sm:$0xff]  ;;  %v99_v40 = vld [vmem:[%s790_s3 + $0x50] sm:$0xff]  ;;  %v100_v41 = vld [vmem:[%s790_s3 + $0x58] sm:$0xff] }
   0xf   :  { %182 = vmatpush.msra.mxu1 %v139_v26  ;;  %228 = vmatpush.msra.mxu3 %v140_v27  ;;  %v131_v42 = vld [vmem:[%s790_s3 + $0x150] sm:$0xff]  ;;  %v132_v43 = vld [vmem:[%s790_s3 + $0x158] sm:$0xff]  ;;  %v97_v44 = vld [vmem:[%s790_s3 + $0x40] sm:$0xff] }
  0x10   :  { %160 = vmatpush.msra.mxu0 %v105_v28  ;;  %206 = vmatpush.msra.mxu2 %v106_v29  ;;  %v98_v45 = vld [vmem:[%s790_s3 + $0x48] sm:$0xff]  ;;  %v129_v46 = vld [vmem:[%s790_s3 + $0x140] sm:$0xff]  ;;  %v95_v48 = vld [vmem:[%s790_s3 + $0x30] sm:$0xff] }
  0x11   :  { %183 = vmatpush.msra.mxu1 %v137_v30  ;;  %229 = vmatpush.msra.mxu3 %v138_v31  ;;  %v130_v47 = vld [vmem:[%s790_s3 + $0x148] sm:$0xff]  ;;  %v96_v49 = vld [vmem:[%s790_s3 + $0x38] sm:$0xff]  ;;  %v127_v50 = vld [vmem:[%s790_s3 + $0x130] sm:$0xff] }
  0x12   :  { %161 = vmatpush.msra.mxu0 %v103_v32  ;;  %207 = vmatpush.msra.mxu2 %v104_v33  ;;  %v128_v51 = vld [vmem:[%s790_s3 + $0x138] sm:$0xff]  ;;  %v93_v52 = vld [vmem:[%s790_s3 + $0x20] sm:$0xff]  ;;  %v94_v53 = vld [vmem:[%s790_s3 + $0x28] sm:$0xff] }
  0x13   :  { %184 = vmatpush.msra.mxu1 %v135_v34  ;;  %230 = vmatpush.msra.mxu3 %v136_v35  ;;  %v125_v54 = vld [vmem:[%s790_s3 + $0x120] sm:$0xff]  ;;  %v126_v55 = vld [vmem:[%s790_s3 + $0x128] sm:$0xff]  ;;  %v91_v56 = vld [vmem:[%s790_s3 + $0x10] sm:$0xff] }
  0x14   :  { %162 = vmatpush.msra.mxu0 %v101_v36  ;;  %208 = vmatpush.msra.mxu2 %v102_v37  ;;  %v92_v57 = vld [vmem:[%s790_s3 + $0x18] sm:$0xff]  ;;  %v123_v58 = vld [vmem:[%s790_s3 + $0x110] sm:$0xff]  ;;  %v89_v60 = vld [vmem:[%s790_s3] sm:$0xff] }
  0x15   :  { %185 = vmatpush.msra.mxu1 %v133_v38  ;;  %231 = vmatpush.msra.mxu3 %v134_v39  ;;  %v124_v59 = vld [vmem:[%s790_s3 + $0x118] sm:$0xff]  ;;  %v90_v61 = vld [vmem:[%s790_s3 + $0x8] sm:$0xff]  ;;  %v51_v62 = vld [vmem:[%s791_s2 + $0xf0] sm:$0xff] }
  0x16   :  { %163 = vmatpush.msra.mxu0 %v99_v40  ;;  %209 = vmatpush.msra.mxu2 %v100_v41  ;;  %v52_v63 = vld [vmem:[%s791_s2 + $0xf8] sm:$0xff]  ;;  %v121_v0 = vld [vmem:[%s790_s3 + $0x100] sm:$0xff]  ;;  %v122_v1 = vld [vmem:[%s790_s3 + $0x108] sm:$0xff] }
  0x17   :  { %186 = vmatpush.msra.mxu1 %v131_v42  ;;  %232 = vmatpush.msra.mxu3 %v132_v43  ;;  %v49_v2 = vld [vmem:[%s791_s2 + $0xe0] sm:$0xff]  ;;  %v83_v3 = vld [vmem:[%s791_s2 + $0x1f0] sm:$0xff]  ;;  %v50_v4 = vld [vmem:[%s791_s2 + $0xe8] sm:$0xff] }
  0x18   :  { %164 = vmatpush.msra.mxu0 %v97_v44  ;;  %210 = vmatpush.msra.mxu2 %v98_v45  ;;  %v84_v5 = vld [vmem:[%s791_s2 + $0x1f8] sm:$0xff]  ;;  %v47_v6 = vld [vmem:[%s791_s2 + $0xd0] sm:$0xff]  ;;  %v81_v7 = vld [vmem:[%s791_s2 + $0x1e0] sm:$0xff] }
  0x19   :  { %187 = vmatpush.msra.mxu1 %v129_v46  ;;  %233 = vmatpush.msra.mxu3 %v130_v47  ;;  %v48_v8 = vld [vmem:[%s791_s2 + $0xd8] sm:$0xff]  ;;  %v82_v9 = vld [vmem:[%s791_s2 + $0x1e8] sm:$0xff]  ;;  %v45_v10 = vld [vmem:[%s791_s2 + $0xc0] sm:$0xff] }
  0x1a   :  { %165 = vmatpush.msra.mxu0 %v95_v48  ;;  %211 = vmatpush.msra.mxu2 %v96_v49  ;;  %v79_v11 = vld [vmem:[%s791_s2 + $0x1d0] sm:$0xff]  ;;  %v46_v12 = vld [vmem:[%s791_s2 + $0xc8] sm:$0xff]  ;;  %v80_v13 = vld [vmem:[%s791_s2 + $0x1d8] sm:$0xff] }
  0x1b   :  { %188 = vmatpush.msra.mxu1 %v127_v50  ;;  %234 = vmatpush.msra.mxu3 %v128_v51  ;;  %v43_v14 = vld [vmem:[%s791_s2 + $0xb0] sm:$0xff]  ;;  %v77_v15 = vld [vmem:[%s791_s2 + $0x1c0] sm:$0xff]  ;;  %v44_v16 = vld [vmem:[%s791_s2 + $0xb8] sm:$0xff] }
  0x1c   :  { %166 = vmatpush.msra.mxu0 %v93_v52  ;;  %212 = vmatpush.msra.mxu2 %v94_v53  ;;  %v78_v17 = vld [vmem:[%s791_s2 + $0x1c8] sm:$0xff]  ;;  %v41_v18 = vld [vmem:[%s791_s2 + $0xa0] sm:$0xff]  ;;  %v75_v19 = vld [vmem:[%s791_s2 + $0x1b0] sm:$0xff] }
  0x1d   :  { %189 = vmatpush.msra.mxu1 %v125_v54  ;;  %235 = vmatpush.msra.mxu3 %v126_v55  ;;  %v42_v20 = vld [vmem:[%s791_s2 + $0xa8] sm:$0xff]  ;;  %v76_v21 = vld [vmem:[%s791_s2 + $0x1b8] sm:$0xff]  ;;  %v39_v22 = vld [vmem:[%s791_s2 + $0x90] sm:$0xff] }
  0x1e   :  { %167 = vmatpush.msra.mxu0 %v91_v56  ;;  %213 = vmatpush.msra.mxu2 %v92_v57  ;;  %v73_v23 = vld [vmem:[%s791_s2 + $0x1a0] sm:$0xff]  ;;  %v40_v24 = vld [vmem:[%s791_s2 + $0x98] sm:$0xff]  ;;  %v74_v25 = vld [vmem:[%s791_s2 + $0x1a8] sm:$0xff] }
  0x1f   :  { %190 = vmatpush.msra.mxu1 %v123_v58  ;;  %236 = vmatpush.msra.mxu3 %v124_v59  ;;  %v37_v26 = vld [vmem:[%s791_s2 + $0x80] sm:$0xff]  ;;  %v71_v27 = vld [vmem:[%s791_s2 + $0x190] sm:$0xff]  ;;  %v38_v28 = vld [vmem:[%s791_s2 + $0x88] sm:$0xff] }
  0x20   :  { %168 = vmatpush.msra.mxu0 %v89_v60  ;;  %214 = vmatpush.msra.mxu2 %v90_v61  ;;  %v72_v29 = vld [vmem:[%s791_s2 + $0x198] sm:$0xff]  ;;  %v85_v30 = vld [vmem:[%s792_s1] sm:$0xff]  ;;  %v86_v31 = vld [vmem:[%s792_s1 + $0x8] sm:$0xff] }
  0x21   :  { %191 = vmatpush.msra.mxu1 %v121_v0  ;;  %237 = vmatpush.msra.mxu3 %v122_v1  ;;  %v35_v32 = vld [vmem:[%s791_s2 + $0x70] sm:$0xff]  ;;  %v69_v33 = vld [vmem:[%s791_s2 + $0x180] sm:$0xff]  ;;  %v36_v34 = vld [vmem:[%s791_s2 + $0x78] sm:$0xff] }
  0x22   :  { %245 = vmatpush.msrb.mxu0 %v51_v62  ;;  %291 = vmatpush.msrb.mxu2 %v52_v63  ;;  %v70_v35 = vld [vmem:[%s791_s2 + $0x188] sm:$0xff]  ;;  %v33_v36 = vld [vmem:[%s791_s2 + $0x60] sm:$0xff]  ;;  %v67_v37 = vld [vmem:[%s791_s2 + $0x170] sm:$0xff] }
  0x23   :  { %268 = vmatpush.msrb.mxu1 %v83_v3  ;;  %314 = vmatpush.msrb.mxu3 %v84_v5  ;;  %v34_v38 = vld [vmem:[%s791_s2 + $0x68] sm:$0xff]  ;;  %v68_v39 = vld [vmem:[%s791_s2 + $0x178] sm:$0xff]  ;;  %v31_v40 = vld [vmem:[%s791_s2 + $0x50] sm:$0xff] }
  0x24   :  { %246 = vmatpush.msrb.mxu0 %v49_v2  ;;  %292 = vmatpush.msrb.mxu2 %v50_v4  ;;  %v65_v41 = vld [vmem:[%s791_s2 + $0x160] sm:$0xff]  ;;  %v32_v42 = vld [vmem:[%s791_s2 + $0x58] sm:$0xff]  ;;  %v66_v43 = vld [vmem:[%s791_s2 + $0x168] sm:$0xff] }
  0x25   :  { %269 = vmatpush.msrb.mxu1 %v81_v7  ;;  %315 = vmatpush.msrb.mxu3 %v82_v9  ;;  %v29_v44 = vld [vmem:[%s791_s2 + $0x40] sm:$0xff]  ;;  %v63_v45 = vld [vmem:[%s791_s2 + $0x150] sm:$0xff]  ;;  %v30_v46 = vld [vmem:[%s791_s2 + $0x48] sm:$0xff] }
  0x26   :  { %247 = vmatpush.msrb.mxu0 %v47_v6  ;;  %293 = vmatpush.msrb.mxu2 %v48_v8  ;;  %v64_v47 = vld [vmem:[%s791_s2 + $0x158] sm:$0xff]  ;;  %v87_v48 = vld [vmem:[%s792_s1 + $0x10] sm:$0xff]  ;;  %v61_v51 = vld [vmem:[%s791_s2 + $0x140] sm:$0xff] }
  0x27   :  { %270 = vmatpush.msrb.mxu1 %v79_v11  ;;  %316 = vmatpush.msrb.mxu3 %v80_v13  ;;  %v88_v49 = vld [vmem:[%s792_s1 + $0x18] sm:$0xff]  ;;  %v27_v50 = vld [vmem:[%s791_s2 + $0x30] sm:$0xff]  ;;  %v62_v53 = vld [vmem:[%s791_s2 + $0x148] sm:$0xff] }
  0x28   :  { %248 = vmatpush.msrb.mxu0 %v45_v10  ;;  %294 = vmatpush.msrb.mxu2 %v46_v12  ;;  %v28_v52 = vld [vmem:[%s791_s2 + $0x38] sm:$0xff]  ;;  %v25_v54 = vld [vmem:[%s791_s2 + $0x20] sm:$0xff]  ;;  %v59_v55 = vld [vmem:[%s791_s2 + $0x130] sm:$0xff] }
  0x29   :  { %271 = vmatpush.msrb.mxu1 %v77_v15  ;;  %317 = vmatpush.msrb.mxu3 %v78_v17  ;;  %v26_v56 = vld [vmem:[%s791_s2 + $0x28] sm:$0xff]  ;;  %v60_v57 = vld [vmem:[%s791_s2 + $0x138] sm:$0xff]  ;;  %v23_v58 = vld [vmem:[%s791_s2 + $0x10] sm:$0xff] }
  0x2a   :  { %249 = vmatpush.msrb.mxu0 %v43_v14  ;;  %295 = vmatpush.msrb.mxu2 %v44_v16  ;;  %v57_v59 = vld [vmem:[%s791_s2 + $0x120] sm:$0xff]  ;;  %v24_v60 = vld [vmem:[%s791_s2 + $0x18] sm:$0xff]  ;;  %v58_v61 = vld [vmem:[%s791_s2 + $0x128] sm:$0xff] }
  0x2b   :  { %272 = vmatpush.msrb.mxu1 %v75_v19  ;;  %318 = vmatpush.msrb.mxu3 %v76_v21  ;;  %v21_v62 = vld [vmem:[%s791_s2] sm:$0xff]  ;;  %v55_v63 = vld [vmem:[%s791_s2 + $0x110] sm:$0xff]  ;;  %v22_v0 = vld [vmem:[%s791_s2 + $0x8] sm:$0xff] }
  0x2c   :  { %250 = vmatpush.msrb.mxu0 %v41_v18  ;;  %296 = vmatpush.msrb.mxu2 %v42_v20  ;;  %v56_v1 = vld [vmem:[%s791_s2 + $0x118] sm:$0xff]  ;;  %v17_v2 = vld [vmem:[%s793_s0] sm:$0xff]  ;;  %v54_v4 = vld [vmem:[%s791_s2 + $0x108] sm:$0xff] }
  0x2d   :  { %273 = vmatpush.msrb.mxu1 %v73_v23  ;;  %319 = vmatpush.msrb.mxu3 %v74_v25  ;;  %v53_v3 = vld [vmem:[%s791_s2 + $0x100] sm:$0xff]  ;;  %v18_v5 = vld [vmem:[%s793_s0 + $0x8] sm:$0xff]  ;;  %v19_v6 = vld [vmem:[%s793_s0 + $0x10] sm:$0xff] }
  0x2e   :  { %251 = vmatpush.msrb.mxu0 %v39_v22  ;;  %297 = vmatpush.msrb.mxu2 %v40_v24  ;;  %v20_v7 = vld [vmem:[%s793_s0 + $0x18] sm:$0xff] }
  0x2f   :  { %274 = vmatpush.msrb.mxu1 %v71_v27  ;;  %320 = vmatpush.msrb.mxu3 %v72_v29 }
  0x30   :  { %252 = vmatpush.msrb.mxu0 %v37_v26  ;;  %298 = vmatpush.msrb.mxu2 %v38_v28 }
  0x31   :  { %169 = vmatmul.f32.vlgmr.msra.gmra.mxu0 %v85_v30  ;;  %215 = vmatmul.f32.vlgmr.msra.gmra.mxu2 %v85_v30 }
  0x32   :  { %238 = vmatmul.f32.vlgmr.msra.gmra.mxu3 %v86_v31  ;;  %253 = vmatpush.msrb.mxu0 %v35_v32 }
  0x33   :  { %275 = vmatpush.msrb.mxu1 %v69_v33  ;;  %299 = vmatpush.msrb.mxu2 %v36_v34 }
  0x34   :  { %321 = vmatpush.msrb.mxu3 %v70_v35  ;;  %192 = vmatmul.f32.vlgmr.msra.gmra.mxu1 %v86_v31 }
  0x35   :  { %254 = vmatpush.msrb.mxu0 %v33_v36  ;;  %276 = vmatpush.msrb.mxu1 %v67_v37 }
  0x36   :  { %300 = vmatpush.msrb.mxu2 %v34_v38  ;;  %322 = vmatpush.msrb.mxu3 %v68_v39 }
  0x37   :  { %255 = vmatpush.msrb.mxu0 %v31_v40  ;;  %277 = vmatpush.msrb.mxu1 %v65_v41 }
  0x38   :  { %301 = vmatpush.msrb.mxu2 %v32_v42  ;;  %323 = vmatpush.msrb.mxu3 %v66_v43 }
  0x39   :  { %256 = vmatpush.msrb.mxu0 %v29_v44  ;;  %278 = vmatpush.msrb.mxu1 %v63_v45 }
  0x3a   :  { %302 = vmatpush.msrb.mxu2 %v30_v46  ;;  %324 = vmatpush.msrb.mxu3 %v64_v47 }
  0x3b   :  { %172 = vmatmul.f32.gmra.mxu0 %v87_v48  ;;  %218 = vmatmul.f32.gmra.mxu2 %v87_v48 }
  0x3c   :  { %241 = vmatmul.f32.gmra.mxu3 %v88_v49  ;;  %257 = vmatpush.msrb.mxu0 %v27_v50 }
  0x3d   :  { %279 = vmatpush.msrb.mxu1 %v61_v51  ;;  %303 = vmatpush.msrb.mxu2 %v28_v52 }
  0x3e   :  { %325 = vmatpush.msrb.mxu3 %v62_v53  ;;  %195 = vmatmul.f32.gmra.mxu1 %v88_v49 }
  0x3f   :  { %258 = vmatpush.msrb.mxu0 %v25_v54  ;;  %280 = vmatpush.msrb.mxu1 %v59_v55 }
  0x40   :  { %304 = vmatpush.msrb.mxu2 %v26_v56  ;;  %326 = vmatpush.msrb.mxu3 %v60_v57 }
  0x41   :  { %259 = vmatpush.msrb.mxu0 %v23_v58  ;;  %281 = vmatpush.msrb.mxu1 %v57_v59 }
  0x42   :  { %305 = vmatpush.msrb.mxu2 %v24_v60  ;;  %327 = vmatpush.msrb.mxu3 %v58_v61 }
  0x43   :  { %260 = vmatpush.msrb.mxu0 %v21_v62  ;;  %282 = vmatpush.msrb.mxu1 %v55_v63 }
  0x44   :  { %306 = vmatpush.msrb.mxu2 %v22_v0  ;;  %328 = vmatpush.msrb.mxu3 %v56_v1 }
  0x45   :  { %261 = vmatmul.f32.vlgmr.msrb.gmra.mxu0 %v17_v2  ;;  %307 = vmatmul.f32.vlgmr.msrb.gmra.mxu2 %v17_v2 }
  0x46   :  { %283 = vmatpush.msrb.mxu1 %v53_v3  ;;  %329 = vmatpush.msrb.mxu3 %v54_v4 }
  0x47   :  { %284 = vmatmul.f32.vlgmr.msrb.gmra.mxu1 %v18_v5  ;;  %330 = vmatmul.f32.vlgmr.msrb.gmra.mxu3 %v18_v5 }
  0x4d   :  { %264 = vmatmul.f32.gmra.mxu0 %v19_v6  ;;  %310 = vmatmul.f32.gmra.mxu2 %v19_v6 }
  0x4f   :  { %287 = vmatmul.f32.gmra.mxu1 %v20_v7  ;;  %333 = vmatmul.f32.gmra.mxu3 %v20_v7 }
  0xae   :  { %v170_v8 = vpop.f32.mrf.mxu0 }
  0xb1   :  { %v193_v9 = vpop.f32.mrf.mxu1 }
  0xb2   :  { %v194_v15 = vadd.f32 %v193_v9, %v170_v8 }
  0xb4   :  { %v216_v10 = vpop.f32.mrf.mxu2 }
  0xb5   :  { %v239_v11 = vpop.f32.mrf.mxu3 }
  0xb6   :  { %v240_v21 = vadd.f32 %v239_v11, %v216_v10 }
  0xb8   :  { %v173_v12 = vpop.f32.mrf.mxu0 }
  0xbb   :  { %v196_v13 = vpop.f32.mrf.mxu1 }
  0xbc   :  { %v197_v23 = vadd.f32 %v196_v13, %v173_v12 }
  0xbe   :  { %v219_v14 = vpop.f32.mrf.mxu2 }
  0xbf   :  { %v242_v16 = vpop.f32.mrf.mxu3 }
  0xc0   :  { %v243_v31 = vadd.f32 %v242_v16, %v219_v14 }
  0xc2   :  { %v262_v17 = vpop.f32.mrf.mxu0 }
  0xc3   :  { %v263_v18 = vadd.f32 %v262_v17, %v194_v15 }
  0xc4   :  { %v285_v19 = vpop.f32.mrf.mxu1 }
  0xc5   :  { %v286_v20 = vadd.f32 %v285_v19, %v263_v18 }
  0xc7   :  { %337 = vst [vmem:[%s794_s4] sm:$0xff] %v286_v20 }
  0xc8   :  { %v308_v22 = vpop.f32.mrf.mxu2 }
  0xc9   :  { %v309_v24 = vadd.f32 %v308_v22, %v240_v21 }
  0xca   :  { %v265_v25 = vpop.f32.mrf.mxu0  ;;  %v331_v26 = vpop.f32.mrf.mxu3 }
  0xcb   :  { %v266_v27 = vadd.f32 %v265_v25, %v197_v23  ;;  %v332_v28 = vadd.f32 %v331_v26, %v309_v24 }
  0xcc   :  { %v288_v29 = vpop.f32.mrf.mxu1 }
  0xcd   :  { %338 = vst [vmem:[%s794_s4 + $0x8] sm:$0xff] %v332_v28  ;;  %v289_v30 = vadd.f32 %v288_v29, %v266_v27 }
  0xcf   :  { %339 = vst [vmem:[%s794_s4 + $0x10] sm:$0xff] %v289_v30 }
  0xd0   :  { %v311_v32 = vpop.f32.mrf.mxu2 }
  0xd1   :  { %v312_v33 = vadd.f32 %v311_v32, %v243_v31 }
  0xd2   :  { %v334_v34 = vpop.f32.mrf.mxu3 }
  0xd3   :  { %v335_v35 = vadd.f32 %v334_v34, %v312_v33 }
  0xd5   :  { %340 = vst [vmem:[%s794_s4 + $0x18] sm:$0xff] %v335_v35 }

</bundles_post_ra>
